<compile_context>
chip_gen: v7x
topology: tpu7x:2x2x1
jax: 0.10.0
libtpu: 0.0.40
codegen_flags: <defaults>
</compile_context>

<pallas_src>
import jax
import jax.numpy as jnp
from jax.experimental import pallas as pl
from jax.experimental.pallas import tpu as pltpu


def _spectral_mul_kernel(xr_ref, xi_ref, wr_ref, wi_ref, or_ref, oi_ref):
    # xr/xi: (Cin, B, Kt)   wr/wi: (Cin, Cout, Kt)   or/oi: (B, Cout, Kt)
    # Kt (modes) is the lane dimension everywhere -> dense, unmasked vld/vst.
    cin = xr_ref.shape[0]

    t_rr = jnp.zeros(or_ref.shape, jnp.float32)
    t_ii = jnp.zeros(or_ref.shape, jnp.float32)
    t_ss = jnp.zeros(or_ref.shape, jnp.float32)

    # Static unroll over input channels (small: FNO "width").  Each step is a
    # lane-dense VPU multiply-accumulate; Gauss 3-multiply complex product:
    #   (xr + i*xi)(wr + i*wi) = (t_rr - t_ii) + i*(t_ss - t_rr - t_ii)
    for i in range(cin):
        xr_i = xr_ref[i][:, None, :]          # (B, 1, Kt)  sublane-broadcast
        xi_i = xi_ref[i][:, None, :]
        wr_i = wr_ref[i][None, :, :]          # (1, Cout, Kt) batch-broadcast
        wi_i = wi_ref[i][None, :, :]
        t_rr = t_rr + xr_i * wr_i
        t_ii = t_ii + xi_i * wi_i
        t_ss = t_ss + (xr_i + xi_i) * (wr_i + wi_i)

    or_ref[...] = t_rr - t_ii
    oi_ref[...] = t_ss - t_rr - t_ii


def _pick_mode_tile(n_modes, B, Cin, Cout, vmem_budget_bytes=8 << 20):
    """Modes (lanes) handled per grid step, sized against a VMEM budget."""
    # f32 bytes per retained mode across re/im of x, w, out, counted twice for
    # Pallas double-buffering.  An 8 MiB budget leaves generous headroom below
    # the 32 MiB scoped-VMEM default (64 MiB physical on v7x).
    per_lane = 2 * 2 * 4 * (B * Cin + Cin * Cout + B * Cout)
    kt = (vmem_budget_bytes // per_lane // 128) * 128
    kt = int(max(128, min(kt, pl.cdiv(n_modes, 128) * 128)))
    return kt


def _compl_mul_modes(xr, xi, wr, wi, kt):
    """Complex contraction over Cin, elementwise along the fused mode axis.

    xr/xi: (Cin, B, K_pad) f32, wr/wi: (Cin, Cout, K_pad) f32
    returns (B, Cout, K_pad) f32 real and imaginary parts.
    K_pad is a multiple of kt (caller pads with zero modes), kt % 128 == 0.
    """
    Cin, B, K_pad = xr.shape
    Cout = wr.shape[1]
    grid = K_pad // kt

    # Only the mode (lane) axis is tiled; the second-minor dims equal the full
    # array dims and kt is a multiple of 128, so the (8,128) rule is satisfied.
    x_spec = pl.BlockSpec((Cin, B, kt), lambda t: (0, 0, t))
    w_spec = pl.BlockSpec((Cin, Cout, kt), lambda t: (0, 0, t))
    o_spec = pl.BlockSpec((B, Cout, kt), lambda t: (0, 0, t))

    return pl.pallas_call(
        _spectral_mul_kernel,
        out_shape=(
            jax.ShapeDtypeStruct((B, Cout, K_pad), jnp.float32),
            jax.ShapeDtypeStruct((B, Cout, K_pad), jnp.float32),
        ),
        grid=(grid,),
        in_specs=[x_spec, x_spec, w_spec, w_spec],
        out_specs=[o_spec, o_spec],
        compiler_params=pltpu.CompilerParams(
            # Mode tiles are independent: shard across TensorCores on v7x.
            dimension_semantics=("parallel",),
        ),
    )(xr, xi, wr, wi)


def spectral_conv2d(x, weights1, weights2, modes1, modes2):
    """Forward pass of SpectralConv2d.

    x:        (B, Cin, H, W) float32   (NCHW, same as PyTorch)
    weights1: (Cin, Cout, modes1, modes2) complex64
    weights2: (Cin, Cout, modes1, modes2) complex64
    returns   (B, Cout, H, W) float32
    """
    B, Cin, H, W = x.shape
    Cout = weights1.shape[1]
    Wf = W // 2 + 1
    m1, m2 = modes1, modes2
    K = 2 * m1 * m2            # both spectral corners fused on one mode axis

    # TODO(synk): FFT/iFFT have no Pallas primitive; computed with jnp.fft (XLA).
    x_ft = jnp.fft.rfft2(x)                                 # (B, Cin, H, Wf) c64

    c1 = x_ft[:, :, :m1, :m2].reshape(B, Cin, m1 * m2)
    c2 = x_ft[:, :, H - m1:, :m2].reshape(B, Cin, m1 * m2)
    xc = jnp.concatenate([c1, c2], axis=-1)                 # (B, Cin, K)
    xc = jnp.transpose(xc, (1, 0, 2))                       # (Cin, B, K)

    wc = jnp.concatenate(
        [weights1.reshape(Cin, Cout, m1 * m2),
         weights2.reshape(Cin, Cout, m1 * m2)], axis=-1)    # (Cin, Cout, K)

    xr = jnp.real(xc).astype(jnp.float32)
    xi = jnp.imag(xc).astype(jnp.float32)
    wr = jnp.real(wc).astype(jnp.float32)
    wi = jnp.imag(wc).astype(jnp.float32)

    kt = _pick_mode_tile(K, B, Cin, Cout)
    k_pad = pl.cdiv(K, kt) * kt
    if k_pad != K:
        pad = ((0, 0), (0, 0), (0, k_pad - K))
        xr, xi = jnp.pad(xr, pad), jnp.pad(xi, pad)   # zero modes -> zero output
        wr, wi = jnp.pad(wr, pad), jnp.pad(wi, pad)

    out_r, out_i = _compl_mul_modes(xr, xi, wr, wi, kt)     # (B, Cout, k_pad)

    out_c = (out_r[:, :, :K] + 1j * out_i[:, :, :K]).astype(jnp.complex64)
    out1 = out_c[:, :, :m1 * m2].reshape(B, Cout, m1, m2)
    out2 = out_c[:, :, m1 * m2:].reshape(B, Cout, m1, m2)

    # Assemble the output spectrum without a zeros + scatter HBM round trip.
    if 2 * m1 <= H:
        mid = jnp.zeros((B, Cout, H - 2 * m1, m2), dtype=jnp.complex64)
        out_ft = jnp.concatenate([out1, mid, out2], axis=2)  # (B, Cout, H, m2)
        out_ft = jnp.pad(out_ft, ((0, 0), (0, 0), (0, 0), (0, Wf - m2)))
    else:
        # Overlapping corners (2*m1 > H): fall back to scatter to exactly
        # reproduce the PyTorch overwrite semantics.
        out_ft = jnp.zeros((B, Cout, H, Wf), dtype=jnp.complex64)
        out_ft = out_ft.at[:, :, :m1, :m2].set(out1)
        out_ft = out_ft.at[:, :, H - m1:, :m2].set(out2)

    return jnp.fft.irfft2(out_ft, s=(H, W)).astype(jnp.float32)


def _reference(x, weights1, weights2, modes1, modes2):
    # Pure-JAX reference mirroring the PyTorch forward.
    B, Cin, H, W = x.shape
    Cout = weights1.shape[1]
    x_ft = jnp.fft.rfft2(x)
    out_ft = jnp.zeros((B, Cout, H, W // 2 + 1), dtype=jnp.complex64)
    out_ft = out_ft.at[:, :, :modes1, :modes2].set(
        jnp.einsum('bixy,ioxy->boxy', x_ft[:, :, :modes1, :modes2], weights1))
    out_ft = out_ft.at[:, :, H - modes1:, :modes2].set(
        jnp.einsum('bixy,ioxy->boxy', x_ft[:, :, -modes1:, :modes2], weights2))
    return jnp.fft.irfft2(out_ft, s=(H, W)).astype(jnp.float32)


if __name__ == "__main__":
    # Small, deterministic configuration.
    B, Cin, Cout = 2, 4, 4
    H = W = 16
    modes1 = modes2 = 4

    key = jax.random.PRNGKey(0)
    kx, kw1r, kw1i, kw2r, kw2i = jax.random.split(key, 5)

    x = jax.random.normal(kx, (B, Cin, H, W), dtype=jnp.float32)

    # PyTorch: weights = scale * torch.rand(..., dtype=cfloat)  (uniform [0,1)
    # on both real and imaginary parts).
    scale = 1.0 / (Cin * Cout)
    w1 = (scale * jax.random.uniform(kw1r, (Cin, Cout, modes1, modes2))
          + 1j * scale * jax.random.uniform(kw1i, (Cin, Cout, modes1, modes2))
          ).astype(jnp.complex64)
    w2 = (scale * jax.random.uniform(kw2r, (Cin, Cout, modes1, modes2))
          + 1j * scale * jax.random.uniform(kw2i, (Cin, Cout, modes1, modes2))
          ).astype(jnp.complex64)

    out = spectral_conv2d(x, w1, w2, modes1, modes2)
    out = jax.block_until_ready(out)

    ref = jax.block_until_ready(_reference(x, w1, w2, modes1, modes2))
    assert out.shape == (B, Cout, H, W)
    assert jnp.allclose(out, ref, atol=1e-5, rtol=1e-5)

    print("KERNEL_OK")
</pallas_src>

<mosaic_0001>
module attributes {stable_mosaic.version = 11 : i64} {
  func.func @_spectral_mul_kernel(%arg0: i32, %arg1: memref<4x2x128xf32, #tpu.memory_space<vmem>>, %arg2: memref<4x2x128xf32, #tpu.memory_space<vmem>>, %arg3: memref<4x4x128xf32, #tpu.memory_space<vmem>>, %arg4: memref<4x4x128xf32, #tpu.memory_space<vmem>>, %arg5: memref<2x4x128xf32, #tpu.memory_space<vmem>>, %arg6: memref<2x4x128xf32, #tpu.memory_space<vmem>>) attributes {dimension_semantics = [#tpu.dimension_semantics<parallel>], iteration_bounds = array<i64: 1>, scalar_prefetch = 0 : i64, scratch_operands = 0 : i64, tpu.core_type = #tpu.core_type<tc>, window_params = [{transform_indices = @transform_0, window_bounds = array<i64: 4, 2, 128>}, {transform_indices = @transform_1, window_bounds = array<i64: 4, 2, 128>}, {transform_indices = @transform_2, window_bounds = array<i64: 4, 4, 128>}, {transform_indices = @transform_3, window_bounds = array<i64: 4, 4, 128>}, {transform_indices = @transform_4, window_bounds = array<i64: 2, 4, 128>}, {transform_indices = @transform_5, window_bounds = array<i64: 2, 4, 128>}]} {
    %cst = arith.constant 0.000000e+00 : f32
    %0 = vector.broadcast %cst : f32 to vector<2x4x128xf32>
    %cst_0 = arith.constant 0.000000e+00 : f32
    %1 = vector.broadcast %cst_0 : f32 to vector<2x4x128xf32>
    %cst_1 = arith.constant 0.000000e+00 : f32
    %2 = vector.broadcast %cst_1 : f32 to vector<2x4x128xf32>
    %c0 = arith.constant 0 : index
    %c0_2 = arith.constant 0 : index
    %c0_3 = arith.constant 0 : index
    %3 = vector.load %arg1[%c0, %c0_2, %c0_3] : memref<4x2x128xf32, #tpu.memory_space<vmem>>, vector<1x2x128xf32>
    %4 = vector.shape_cast %3 : vector<1x2x128xf32> to vector<2x128xf32>
    %5 = vector.shape_cast %4 : vector<2x128xf32> to vector<2x1x128xf32>
    %c0_4 = arith.constant 0 : index
    %c0_5 = arith.constant 0 : index
    %c0_6 = arith.constant 0 : index
    %6 = vector.load %arg2[%c0_4, %c0_5, %c0_6] : memref<4x2x128xf32, #tpu.memory_space<vmem>>, vector<1x2x128xf32>
    %7 = vector.shape_cast %6 : vector<1x2x128xf32> to vector<2x128xf32>
    %8 = vector.shape_cast %7 : vector<2x128xf32> to vector<2x1x128xf32>
    %c0_7 = arith.constant 0 : index
    %c0_8 = arith.constant 0 : index
    %c0_9 = arith.constant 0 : index
    %9 = vector.load %arg3[%c0_7, %c0_8, %c0_9] : memref<4x4x128xf32, #tpu.memory_space<vmem>>, vector<1x4x128xf32>
    %10 = vector.shape_cast %9 : vector<1x4x128xf32> to vector<4x128xf32>
    %11 = vector.shape_cast %10 : vector<4x128xf32> to vector<1x4x128xf32>
    %c0_10 = arith.constant 0 : index
    %c0_11 = arith.constant 0 : index
    %c0_12 = arith.constant 0 : index
    %12 = vector.load %arg4[%c0_10, %c0_11, %c0_12] : memref<4x4x128xf32, #tpu.memory_space<vmem>>, vector<1x4x128xf32>
    %13 = vector.shape_cast %12 : vector<1x4x128xf32> to vector<4x128xf32>
    %14 = vector.shape_cast %13 : vector<4x128xf32> to vector<1x4x128xf32>
    %15 = vector.broadcast %5 : vector<2x1x128xf32> to vector<2x4x128xf32>
    %16 = vector.broadcast %11 : vector<1x4x128xf32> to vector<2x4x128xf32>
    %17 = arith.mulf %15, %16 : vector<2x4x128xf32>
    %18 = arith.addf %0, %17 : vector<2x4x128xf32>
    %19 = vector.broadcast %8 : vector<2x1x128xf32> to vector<2x4x128xf32>
    %20 = vector.broadcast %14 : vector<1x4x128xf32> to vector<2x4x128xf32>
    %21 = arith.mulf %19, %20 : vector<2x4x128xf32>
    %22 = arith.addf %1, %21 : vector<2x4x128xf32>
    %23 = arith.addf %5, %8 : vector<2x1x128xf32>
    %24 = arith.addf %11, %14 : vector<1x4x128xf32>
    %25 = vector.broadcast %23 : vector<2x1x128xf32> to vector<2x4x128xf32>
    %26 = vector.broadcast %24 : vector<1x4x128xf32> to vector<2x4x128xf32>
    %27 = arith.mulf %25, %26 : vector<2x4x128xf32>
    %28 = arith.addf %2, %27 : vector<2x4x128xf32>
    %c1 = arith.constant 1 : index
    %c0_13 = arith.constant 0 : index
    %c0_14 = arith.constant 0 : index
    %29 = vector.load %arg1[%c1, %c0_13, %c0_14] : memref<4x2x128xf32, #tpu.memory_space<vmem>>, vector<1x2x128xf32>
    %30 = vector.shape_cast %29 : vector<1x2x128xf32> to vector<2x128xf32>
    %31 = vector.shape_cast %30 : vector<2x128xf32> to vector<2x1x128xf32>
    %c1_15 = arith.constant 1 : index
    %c0_16 = arith.constant 0 : index
    %c0_17 = arith.constant 0 : index
    %32 = vector.load %arg2[%c1_15, %c0_16, %c0_17] : memref<4x2x128xf32, #tpu.memory_space<vmem>>, vector<1x2x128xf32>
    %33 = vector.shape_cast %32 : vector<1x2x128xf32> to vector<2x128xf32>
    %34 = vector.shape_cast %33 : vector<2x128xf32> to vector<2x1x128xf32>
    %c1_18 = arith.constant 1 : index
    %c0_19 = arith.constant 0 : index
    %c0_20 = arith.constant 0 : index
    %35 = vector.load %arg3[%c1_18, %c0_19, %c0_20] : memref<4x4x128xf32, #tpu.memory_space<vmem>>, vector<1x4x128xf32>
    %36 = vector.shape_cast %35 : vector<1x4x128xf32> to vector<4x128xf32>
    %37 = vector.shape_cast %36 : vector<4x128xf32> to vector<1x4x128xf32>
    %c1_21 = arith.constant 1 : index
    %c0_22 = arith.constant 0 : index
    %c0_23 = arith.constant 0 : index
    %38 = vector.load %arg4[%c1_21, %c0_22, %c0_23] : memref<4x4x128xf32, #tpu.memory_space<vmem>>, vector<1x4x128xf32>
    %39 = vector.shape_cast %38 : vector<1x4x128xf32> to vector<4x128xf32>
    %40 = vector.shape_cast %39 : vector<4x128xf32> to vector<1x4x128xf32>
    %41 = vector.broadcast %31 : vector<2x1x128xf32> to vector<2x4x128xf32>
    %42 = vector.broadcast %37 : vector<1x4x128xf32> to vector<2x4x128xf32>
    %43 = arith.mulf %41, %42 : vector<2x4x128xf32>
    %44 = arith.addf %18, %43 : vector<2x4x128xf32>
    %45 = vector.broadcast %34 : vector<2x1x128xf32> to vector<2x4x128xf32>
    %46 = vector.broadcast %40 : vector<1x4x128xf32> to vector<2x4x128xf32>
    %47 = arith.mulf %45, %46 : vector<2x4x128xf32>
    %48 = arith.addf %22, %47 : vector<2x4x128xf32>
    %49 = arith.addf %31, %34 : vector<2x1x128xf32>
    %50 = arith.addf %37, %40 : vector<1x4x128xf32>
    %51 = vector.broadcast %49 : vector<2x1x128xf32> to vector<2x4x128xf32>
    %52 = vector.broadcast %50 : vector<1x4x128xf32> to vector<2x4x128xf32>
    %53 = arith.mulf %51, %52 : vector<2x4x128xf32>
    %54 = arith.addf %28, %53 : vector<2x4x128xf32>
    %c2 = arith.constant 2 : index
    %c0_24 = arith.constant 0 : index
    %c0_25 = arith.constant 0 : index
    %55 = vector.load %arg1[%c2, %c0_24, %c0_25] : memref<4x2x128xf32, #tpu.memory_space<vmem>>, vector<1x2x128xf32>
    %56 = vector.shape_cast %55 : vector<1x2x128xf32> to vector<2x128xf32>
    %57 = vector.shape_cast %56 : vector<2x128xf32> to vector<2x1x128xf32>
    %c2_26 = arith.constant 2 : index
    %c0_27 = arith.constant 0 : index
    %c0_28 = arith.constant 0 : index
    %58 = vector.load %arg2[%c2_26, %c0_27, %c0_28] : memref<4x2x128xf32, #tpu.memory_space<vmem>>, vector<1x2x128xf32>
    %59 = vector.shape_cast %58 : vector<1x2x128xf32> to vector<2x128xf32>
    %60 = vector.shape_cast %59 : vector<2x128xf32> to vector<2x1x128xf32>
    %c2_29 = arith.constant 2 : index
    %c0_30 = arith.constant 0 : index
    %c0_31 = arith.constant 0 : index
    %61 = vector.load %arg3[%c2_29, %c0_30, %c0_31] : memref<4x4x128xf32, #tpu.memory_space<vmem>>, vector<1x4x128xf32>
    %62 = vector.shape_cast %61 : vector<1x4x128xf32> to vector<4x128xf32>
    %63 = vector.shape_cast %62 : vector<4x128xf32> to vector<1x4x128xf32>
    %c2_32 = arith.constant 2 : index
    %c0_33 = arith.constant 0 : index
    %c0_34 = arith.constant 0 : index
    %64 = vector.load %arg4[%c2_32, %c0_33, %c0_34] : memref<4x4x128xf32, #tpu.memory_space<vmem>>, vector<1x4x128xf32>
    %65 = vector.shape_cast %64 : vector<1x4x128xf32> to vector<4x128xf32>
    %66 = vector.shape_cast %65 : vector<4x128xf32> to vector<1x4x128xf32>
    %67 = vector.broadcast %57 : vector<2x1x128xf32> to vector<2x4x128xf32>
    %68 = vector.broadcast %63 : vector<1x4x128xf32> to vector<2x4x128xf32>
    %69 = arith.mulf %67, %68 : vector<2x4x128xf32>
    %70 = arith.addf %44, %69 : vector<2x4x128xf32>
    %71 = vector.broadcast %60 : vector<2x1x128xf32> to vector<2x4x128xf32>
    %72 = vector.broadcast %66 : vector<1x4x128xf32> to vector<2x4x128xf32>
    %73 = arith.mulf %71, %72 : vector<2x4x128xf32>
    %74 = arith.addf %48, %73 : vector<2x4x128xf32>
    %75 = arith.addf %57, %60 : vector<2x1x128xf32>
    %76 = arith.addf %63, %66 : vector<1x4x128xf32>
    %77 = vector.broadcast %75 : vector<2x1x128xf32> to vector<2x4x128xf32>
    %78 = vector.broadcast %76 : vector<1x4x128xf32> to vector<2x4x128xf32>
    %79 = arith.mulf %77, %78 : vector<2x4x128xf32>
    %80 = arith.addf %54, %79 : vector<2x4x128xf32>
    %c3 = arith.constant 3 : index
    %c0_35 = arith.constant 0 : index
    %c0_36 = arith.constant 0 : index
    %81 = vector.load %arg1[%c3, %c0_35, %c0_36] : memref<4x2x128xf32, #tpu.memory_space<vmem>>, vector<1x2x128xf32>
    %82 = vector.shape_cast %81 : vector<1x2x128xf32> to vector<2x128xf32>
    %83 = vector.shape_cast %82 : vector<2x128xf32> to vector<2x1x128xf32>
    %c3_37 = arith.constant 3 : index
    %c0_38 = arith.constant 0 : index
    %c0_39 = arith.constant 0 : index
    %84 = vector.load %arg2[%c3_37, %c0_38, %c0_39] : memref<4x2x128xf32, #tpu.memory_space<vmem>>, vector<1x2x128xf32>
    %85 = vector.shape_cast %84 : vector<1x2x128xf32> to vector<2x128xf32>
    %86 = vector.shape_cast %85 : vector<2x128xf32> to vector<2x1x128xf32>
    %c3_40 = arith.constant 3 : index
    %c0_41 = arith.constant 0 : index
    %c0_42 = arith.constant 0 : index
    %87 = vector.load %arg3[%c3_40, %c0_41, %c0_42] : memref<4x4x128xf32, #tpu.memory_space<vmem>>, vector<1x4x128xf32>
    %88 = vector.shape_cast %87 : vector<1x4x128xf32> to vector<4x128xf32>
    %89 = vector.shape_cast %88 : vector<4x128xf32> to vector<1x4x128xf32>
    %c3_43 = arith.constant 3 : index
    %c0_44 = arith.constant 0 : index
    %c0_45 = arith.constant 0 : index
    %90 = vector.load %arg4[%c3_43, %c0_44, %c0_45] : memref<4x4x128xf32, #tpu.memory_space<vmem>>, vector<1x4x128xf32>
    %91 = vector.shape_cast %90 : vector<1x4x128xf32> to vector<4x128xf32>
    %92 = vector.shape_cast %91 : vector<4x128xf32> to vector<1x4x128xf32>
    %93 = vector.broadcast %83 : vector<2x1x128xf32> to vector<2x4x128xf32>
    %94 = vector.broadcast %89 : vector<1x4x128xf32> to vector<2x4x128xf32>
    %95 = arith.mulf %93, %94 : vector<2x4x128xf32>
    %96 = arith.addf %70, %95 : vector<2x4x128xf32>
    %97 = vector.broadcast %86 : vector<2x1x128xf32> to vector<2x4x128xf32>
    %98 = vector.broadcast %92 : vector<1x4x128xf32> to vector<2x4x128xf32>
    %99 = arith.mulf %97, %98 : vector<2x4x128xf32>
    %100 = arith.addf %74, %99 : vector<2x4x128xf32>
    %101 = arith.addf %83, %86 : vector<2x1x128xf32>
    %102 = arith.addf %89, %92 : vector<1x4x128xf32>
    %103 = vector.broadcast %101 : vector<2x1x128xf32> to vector<2x4x128xf32>
    %104 = vector.broadcast %102 : vector<1x4x128xf32> to vector<2x4x128xf32>
    %105 = arith.mulf %103, %104 : vector<2x4x128xf32>
    %106 = arith.addf %80, %105 : vector<2x4x128xf32>
    %107 = arith.subf %96, %100 : vector<2x4x128xf32>
    %c0_46 = arith.constant 0 : index
    %c0_47 = arith.constant 0 : index
    %c0_48 = arith.constant 0 : index
    %108 = vector.load %arg5[%c0_46, %c0_47, %c0_48] : memref<2x4x128xf32, #tpu.memory_space<vmem>>, vector<2x4x128xf32>
    tpu.vector_store %arg5[%c0_46, %c0_47, %c0_48], %107 {strides = array<i32>} : memref<2x4x128xf32, #tpu.memory_space<vmem>>, vector<2x4x128xf32>,
    %109 = arith.subf %106, %96 : vector<2x4x128xf32>
    %110 = arith.subf %109, %100 : vector<2x4x128xf32>
    %c0_49 = arith.constant 0 : index
    %c0_50 = arith.constant 0 : index
    %c0_51 = arith.constant 0 : index
    %111 = vector.load %arg6[%c0_49, %c0_50, %c0_51] : memref<2x4x128xf32, #tpu.memory_space<vmem>>, vector<2x4x128xf32>
    tpu.vector_store %arg6[%c0_49, %c0_50, %c0_51], %110 {strides = array<i32>} : memref<2x4x128xf32, #tpu.memory_space<vmem>>, vector<2x4x128xf32>,
    return
  }
  func.func @transform_0(%arg0: i32) -> (i32, i32, i32) {
    %c0_i32 = arith.constant 0 : i32
    %c0_i32_0 = arith.constant 0 : i32
    %c0_i32_1 = arith.constant 0 : i32
    return %c0_i32, %c0_i32_0, %arg0 : i32, i32, i32
  }
  func.func @transform_1(%arg0: i32) -> (i32, i32, i32) {
    %c0_i32 = arith.constant 0 : i32
    %c0_i32_0 = arith.constant 0 : i32
    %c0_i32_1 = arith.constant 0 : i32
    return %c0_i32, %c0_i32_0, %arg0 : i32, i32, i32
  }
  func.func @transform_2(%arg0: i32) -> (i32, i32, i32) {
    %c0_i32 = arith.constant 0 : i32
    %c0_i32_0 = arith.constant 0 : i32
    %c0_i32_1 = arith.constant 0 : i32
    return %c0_i32, %c0_i32_0, %arg0 : i32, i32, i32
  }
  func.func @transform_3(%arg0: i32) -> (i32, i32, i32) {
    %c0_i32 = arith.constant 0 : i32
    %c0_i32_0 = arith.constant 0 : i32
    %c0_i32_1 = arith.constant 0 : i32
    return %c0_i32, %c0_i32_0, %arg0 : i32, i32, i32
  }
  func.func @transform_4(%arg0: i32) -> (i32, i32, i32) {
    %c0_i32 = arith.constant 0 : i32
    %c0_i32_0 = arith.constant 0 : i32
    %c0_i32_1 = arith.constant 0 : i32
    return %c0_i32, %c0_i32_0, %arg0 : i32, i32, i32
  }
  func.func @transform_5(%arg0: i32) -> (i32, i32, i32) {
    %c0_i32 = arith.constant 0 : i32
    %c0_i32_0 = arith.constant 0 : i32
    %c0_i32_1 = arith.constant 0 : i32
    return %c0_i32, %c0_i32_0, %arg0 : i32, i32, i32
  }
}

</mosaic_0001>

<bundles_post_ra>
// kernel: tpu_custom_call.1
= control target key start
LH: loop header
LB: loop body
LE: loop exit
PB: predicated region body
PF: predicated region fallthrough
CT: control target
= control target key end

     0   :  { %11 = vsyncpa [#allocation3], 0  ;;  %s914_s0 = inlined_call_operand.hbm [shape: f32[4,2,128], index: 0, kind: input, shape index: {}]   ;;  %s915_s1 = inlined_call_operand.hbm [shape: f32[4,2,128], index: 1, kind: input, shape index: {}]   ;;  %s916_s2 = inlined_call_operand.hbm [shape: f32[4,4,128], index: 2, kind: input, shape index: {}]   ;;  %s917_s3 = inlined_call_operand.hbm [shape: f32[4,4,128], index: 3, kind: input, shape index: {}]   ;;  %s918_s4 = inlined_call_operand.hbm [shape: f32[2,4,128], index: 4, kind: output, shape index: {0}]   ;;  %s919_s5 = inlined_call_operand.hbm [shape: f32[2,4,128], index: 5, kind: output, shape index: {1}]  }
   0x1   :  { %12 = vsyncpa [#allocation6], 0 }
   0x2   :  { %13 = vsyncpa [#allocation9], 0 }
   0x3   :  { %14 = vsyncpa [#allocation4], 0 }
   0x4   :  { %15 = vsyncpa [#allocation12], 0  ;;  %s698_s18 = smov [#allocation5]   ;;  %s699_s20 = smov [#allocation2]  }
   0x5   :  { %s33_s19 = sshll.u32 %s698_s18, 4  ;;  %s21_s21 = sshll.u32 %s699_s20, 4  ;;  %s34_s19 = int_to_ptr.vmem [resolvable:$true] %s33_s19  ;;  %s739_s21 = int_to_ptr.vmem [resolvable:$true] %s21_s21 }
   0x6   :  { %s556_s24 = scalar_lea.hbm %s915_s1, 128 }
   0x7   :  { %p557_p0 = scmp.ne.s32.totalorder %s915_s1, %s556_s24  ;;  %p560_p1 = scmp.lt.u32.totalorder %s556_s24, %s915_s1 }
   0x9   :  { %p562_p2 = pnand %p560_p1, %p557_p0 }
   0xb   :  { %565 = shalt.err (!%p562_p2)
}
   0xc   :  { %s566_s29 = scalar_lea.vmem %s34_s19, 128  ;;  %p571_p4 = scmp.lt.s32.totalorder %s34_s19, %s34_s19 }
   0xd   :  { %p567_p3 = scmp.ne.s32.totalorder %s34_s19, %s566_s29  ;;  %p572_p5 = scmp.lt.s32.totalorder %s566_s29, %s566_s29 }
   0xf   :  { %p573_p6 = por %p572_p5, %p571_p4 }
  0x11   :  { %p574_p7 = pnand %p573_p6, %p567_p3 }
  0x13   :  { %577 = shalt.err (!%p574_p7)
}
  0x14   :  { %s700_s30 = smov 32   ;;  %s701_s6 = smov 2  }
  0x15   :  { %39 = dma.hbm_to_vmem [thread:$0]  %s915_s1, 128, %s34_s19, [#allocation6], %s700_s30, %s700_s30, %s701_s6  }
  0x16   :  { %s578_s11 = scalar_lea.hbm %s914_s0, 128 }
  0x17   :  { %p579_p8 = scmp.ne.s32.totalorder %s914_s0, %s578_s11  ;;  %p582_p9 = scmp.lt.u32.totalorder %s578_s11, %s914_s0 }
  0x19   :  { %p584_p10 = pnand %p582_p9, %p579_p8 }
  0x1b   :  { %587 = shalt.err (!%p584_p10)
}
  0x1c   :  { %s588_s16 = scalar_lea.vmem %s739_s21, 128  ;;  %p593_p12 = scmp.lt.s32.totalorder %s739_s21, %s739_s21 }
  0x1d   :  { %p589_p11 = scmp.ne.s32.totalorder %s739_s21, %s588_s16  ;;  %p594_p13 = scmp.lt.s32.totalorder %s588_s16, %s588_s16 }
  0x1f   :  { %p595_p0 = por %p594_p13, %p593_p12 }
  0x21   :  { %p596_p1 = pnand %p595_p0, %p589_p11 }
  0x23   :  { %599 = shalt.err (!%p596_p1)
}
  0x24   :  { %27 = dma.hbm_to_vmem [thread:$0]  %s914_s0, 128, %s739_s21, [#allocation3], %s700_s30, %s700_s30, %s701_s6  }
  0x25   :  { %s702_s18 = smov [#allocation7]   ;;  %s600_s23 = scalar_lea.hbm %s916_s2, 256 }
  0x26   :  { %s45_s19 = sshll.u32 %s702_s18, 4  ;;  %p601_p2 = scmp.ne.s32.totalorder %s916_s2, %s600_s23  ;;  %s46_s19 = int_to_ptr.vmem [resolvable:$true] %s45_s19 }
  0x27   :  { %p604_p3 = scmp.lt.u32.totalorder %s600_s23, %s916_s2 }
  0x29   :  { %p606_p4 = pnand %p604_p3, %p601_p2 }
  0x2b   :  { %609 = shalt.err (!%p606_p4)
}
  0x2c   :  { %s610_s28 = scalar_lea.vmem %s46_s19, 256  ;;  %p615_p6 = scmp.lt.s32.totalorder %s46_s19, %s46_s19 }
  0x2d   :  { %p611_p5 = scmp.ne.s32.totalorder %s46_s19, %s610_s28  ;;  %p616_p7 = scmp.lt.s32.totalorder %s610_s28, %s610_s28 }
  0x2f   :  { %p617_p8 = por %p616_p7, %p615_p6 }
  0x31   :  { %p618_p9 = pnand %p617_p8, %p611_p5 }
  0x33   :  { %621 = shalt.err (!%p618_p9)
}
  0x34   :  { %s703_s0 = smov 64   ;;  %s704_s21 = smov 4  }
  0x35   :  { %51 = dma.hbm_to_vmem [thread:$0]  %s916_s2, 256, %s46_s19, [#allocation6], %s703_s0, %s703_s0, %s704_s21  }
  0x36   :  { %s705_s6 = smov [#allocation8]   ;;  %s622_s10 = scalar_lea.hbm %s917_s3, 256 }
  0x37   :  { %s57_s7 = sshll.u32 %s705_s6, 4  ;;  %p623_p10 = scmp.ne.s32.totalorder %s917_s3, %s622_s10  ;;  %s58_s7 = int_to_ptr.vmem [resolvable:$true] %s57_s7 }
  0x38   :  { %p626_p11 = scmp.lt.u32.totalorder %s622_s10, %s917_s3 }
  0x3a   :  { %p628_p12 = pnand %p626_p11, %p623_p10 }
  0x3c   :  { %631 = shalt.err (!%p628_p12)
}
  0x3d   :  { %s632_s15 = scalar_lea.vmem %s58_s7, 256  ;;  %p637_p0 = scmp.lt.s32.totalorder %s58_s7, %s58_s7 }
  0x3e   :  { %p633_p13 = scmp.ne.s32.totalorder %s58_s7, %s632_s15  ;;  %p638_p1 = scmp.lt.s32.totalorder %s632_s15, %s632_s15 }
  0x40   :  { %p639_p2 = por %p638_p1, %p637_p0 }
  0x42   :  { %p640_p3 = pnand %p639_p2, %p633_p13 }
  0x44   :  { %643 = shalt.err (!%p640_p3)
}
  0x45   :  { %63 = dma.hbm_to_vmem [thread:$0]  %s917_s3, 256, %s58_s7, [#allocation9], %s703_s0, %s703_s0, %s704_s21  }
  0x46   :  { %688 = dma.done.wait [#allocation3], 128  }
  0x47   :  { %689 = vsyncadd [#allocation3], 4294967168 }
  0x48   :  { %690 = dma.done.wait [#allocation6], 384  }
  0x49   :  { %691 = vsyncadd [#allocation6], 4294966912 }
  0x4a   :  { %692 = dma.done.wait [#allocation9], 256  }
  0x4b   :  { %693 = vsyncadd [#allocation9], 4294967040  ;;  %v89_v0 = vlaneseq  ;;  %v706_v1 = vmov 1966171168   ;;  %v128_v8 = vld [vmem:[#allocation7] sm:$0xf] }
  0x4c   :  { %v87_v2 = vunpack.c.l.s4 %v706_v1  ;;  %v537_v7 = vld.sshfl [vmem:[#allocation2] sm:$0x11 pattern:$0x75316420]  ;;  %v232_v33 = vld [vmem:[#allocation7 + $0x4] sm:$0xf] }
  0x4d   :  { %v90_v3 = vshrl.u32 %v89_v0, 7  ;;  %v538_v10 = vld.sshfl [vmem:[#allocation5] sm:$0x11 pattern:$0x75316420]  ;;  %v85_v12 = vcombine.high %v537_v7, %v537_v7  ;;  %s707_s3 = smov [#allocation10]  }
  0x4e   :  { %v88_v4 = vunpack.c.0.s8 %v87_v2  ;;  %v129_v11 = vld [vmem:[#allocation8] sm:$0xf]  ;;  %v111_v15 = vcombine.high %v538_v10, %v538_v10  ;;  %v540_v19 = vld.sshfl [vmem:[#allocation5 + $0x2] sm:$0x11 pattern:$0x75316420] }
  0x4f   :  { %v802_v6 = vsub.s32 0, %v90_v3  ;;  %v539_v14 = vld.sshfl [vmem:[#allocation2 + $0x2] sm:$0x11 pattern:$0x75316420]  ;;  %v810_v16 = vadd.f32 %v129_v11, %v128_v8  ;;  %v214_v26 = vcombine.high %v540_v19, %v540_v19  ;;  %s507_s1 = sshll.u32 %s707_s3, 4  ;;  %s508_s1 = int_to_ptr.vmem [resolvable:$true] %s507_s1 }
  0x50   :  { %v800_v5 = vsub.s32 %v88_v4, %v90_v3  ;;  %v187_v21 = vcombine.high %v539_v14, %v539_v14  ;;  %v541_v24 = vld.sshfl [vmem:[#allocation2 + $0x4] sm:$0x11 pattern:$0x75316420]  ;;  %v337_v45 = vld [vmem:[#allocation7 + $0x8] sm:$0xf]  ;;  %p649_p5 = scmp.lt.s32.totalorder %s508_s1, %s508_s1 }
  0x51   :  { %v542_v30 = vld.sshfl [vmem:[#allocation5 + $0x4] sm:$0x11 pattern:$0x75316420]  ;;  %v234_v38 = vld [vmem:[#allocation8 + $0x4] sm:$0xf]  ;;  %v292_v63 = vcombine.high %v541_v24, %v541_v24 }
  0x52   :  { %v805_v9 = vrot.slane %v537_v7, %v800_v5  ;;  %v808_v13 = vrot.slane %v538_v10, %v800_v5  ;;  %v815_v18 = vrot.slane %v539_v14, %v800_v5  ;;  %v818_v20 = vrot.slane %v85_v12, %v800_v5  ;;  %v543_v36 = vld.sshfl [vmem:[#allocation2 + $0x6] sm:$0x11 pattern:$0x75316420]  ;;  %v339_v50 = vld [vmem:[#allocation8 + $0x8] sm:$0xf] }
  0x53   :  { %v823_v23 = vrot.slane %v540_v19, %v800_v5  ;;  %v826_v25 = vrot.slane %v111_v15, %v800_v5  ;;  %v831_v29 = vrot.slane %v541_v24, %v800_v5  ;;  %v326_v35 = vrot.slane %v542_v30, %v800_v5  ;;  %v544_v42 = vld.sshfl [vmem:[#allocation5 + $0x6] sm:$0x11 pattern:$0x75316420]  ;;  %v442_v56 = vld [vmem:[#allocation7 + $0xc] sm:$0xf] }
  0x54   :  { %v133_v17 = vrot.slane %v805_v9, %v802_v6  ;;  %v147_v22 = vrot.slane %v808_v13, %v802_v6  ;;  %v238_v28 = vrot.slane %v815_v18, %v802_v6  ;;  %v137_v31 = vrot.slane %v818_v20, %v802_v6  ;;  %v444_v60 = vld [vmem:[#allocation8 + $0xc] sm:$0xf]  ;;  %s644_s17 = scalar_lea.vmem %s508_s1, 128 }
  0x55   :  { %v252_v34 = vrot.slane %v823_v23, %v802_v6  ;;  %v151_v37 = vrot.slane %v826_v25, %v802_v6  ;;  %v343_v40 = vrot.slane %v831_v29, %v802_v6  ;;  %v404_v41 = vrot.slane %v543_v36, %v800_v5  ;;  %p645_p4 = scmp.ne.s32.totalorder %s508_s1, %s644_s17  ;;  %p650_p6 = scmp.lt.s32.totalorder %s644_s17, %s644_s17 }
  0x56   :  { %v140_v27 = vmul.f32 %v133_v17, %v128_v8  ;;  %v154_v32 = vmul.f32 %v147_v22, %v129_v11  ;;  %v245_v39 = vmul.f32 %v238_v28, %v232_v33  ;;  %v141_v43 = vmul.f32 %v137_v31, %v128_v8 }
  0x57   :  { %v259_v44 = vmul.f32 %v252_v34, %v234_v38  ;;  %v357_v46 = vrot.slane %v326_v35, %v802_v6  ;;  %v431_v47 = vrot.slane %v544_v42, %v800_v5  ;;  %v155_v48 = vmul.f32 %v151_v37, %v129_v11  ;;  %p651_p7 = por %p650_p6, %p649_p5 }
  0x58   :  { %v247_v49 = vadd.f32 %v245_v39, %v140_v27  ;;  %v350_v51 = vmul.f32 %v343_v40, %v337_v45  ;;  %v448_v52 = vrot.slane %v404_v41, %v802_v6  ;;  %v201_v53 = vrot.slane %v187_v21, %v800_v5 }
  0x59   :  { %v261_v54 = vadd.f32 %v259_v44, %v154_v32  ;;  %v364_v55 = vmul.f32 %v357_v46, %v339_v50  ;;  %v462_v57 = vrot.slane %v431_v47, %v802_v6  ;;  %v228_v58 = vrot.slane %v214_v26, %v800_v5  ;;  %p652_p8 = pnand %p651_p7, %p645_p4 }
  0x5a   :  { %v352_v59 = vadd.f32 %v350_v51, %v247_v49  ;;  %v455_v61 = vmul.f32 %v448_v52, %v442_v56  ;;  %v242_v62 = vrot.slane %v201_v53, %v802_v6  ;;  %v319_v3 = vcombine.high %v542_v30, %v542_v30 }
  0x5b   :  { %v366_v0 = vadd.f32 %v364_v55, %v261_v54  ;;  %v469_v1 = vmul.f32 %v462_v57, %v444_v60  ;;  %v256_v2 = vrot.slane %v228_v58, %v802_v6  ;;  %v306_v8 = vrot.slane %v292_v63, %v800_v5 }
  0x5c   :  { %v851_v4 = vadd.f32 %v455_v61, %v352_v59  ;;  %v246_v7 = vmul.f32 %v242_v62, %v232_v33  ;;  %v397_v10 = vcombine.high %v543_v36, %v543_v36  ;;  %v333_v14 = vrot.slane %v319_v3, %v800_v5 }
  0x5d   :  { %v854_v11 = vadd.f32 %v469_v1, %v366_v0  ;;  %v260_v12 = vmul.f32 %v256_v2, %v234_v38  ;;  %v424_v15 = vcombine.high %v544_v42, %v544_v42  ;;  %v347_v19 = vrot.slane %v306_v8, %v802_v6 }
  0x5e   :  { %v248_v17 = vadd.f32 %v246_v7, %v141_v43  ;;  %v411_v21 = vrot.slane %v397_v10, %v800_v5  ;;  %v158_v22 = vadd.f32 %v808_v13, %v805_v9  ;;  %v361_v27 = vrot.slane %v333_v14, %v802_v6 }
  0x5f   :  { %v492_v24 = vsub.f32 %v851_v4, %v854_v11  ;;  %v262_v26 = vadd.f32 %v260_v12, %v155_v48  ;;  %v438_v28 = vrot.slane %v424_v15, %v800_v5  ;;  %v351_v30 = vmul.f32 %v347_v19, %v337_v45 }
  0x60   :  { %v452_v31 = vrot.slane %v411_v21, %v802_v6  ;;  %v166_v32 = vrot.slane %v158_v22, %v802_v6  ;;  %v263_v34 = vadd.f32 %v823_v23, %v815_v18  ;;  %v365_v36 = vmul.f32 %v361_v27, %v339_v50 }
  0x61   :  { %494 = vst [vmem:[#allocation10] sm:$0xf] %v492_v24  ;;  %v466_v9 = vrot.slane %v438_v28, %v802_v6  ;;  %v265_v13 = vadd.f32 %v234_v38, %v232_v33  ;;  %v368_v37 = vadd.f32 %v326_v35, %v831_v29  ;;  %v353_v39 = vadd.f32 %v351_v30, %v248_v17 }
  0x62   :  { %v456_v40 = vmul.f32 %v452_v31, %v442_v56  ;;  %v173_v42 = vmul.f32 %v166_v32, %v810_v16  ;;  %v271_v5 = vrot.slane %v263_v34, %v802_v6  ;;  %v367_v43 = vadd.f32 %v365_v36, %v262_v26 }
  0x63   :  { %v470_v44 = vmul.f32 %v466_v9, %v444_v60  ;;  %v370_v46 = vadd.f32 %v339_v50, %v337_v45  ;;  %v376_v48 = vrot.slane %v368_v37, %v802_v6  ;;  %v473_v23 = vadd.f32 %v431_v47, %v404_v41 }
  0x64   :  { %v458_v49 = vadd.f32 %v456_v40, %v353_v39  ;;  %v278_v18 = vmul.f32 %v271_v5, %v265_v13  ;;  %v475_v51 = vadd.f32 %v444_v60, %v442_v56  ;;  %v159_v29 = vadd.f32 %v826_v25, %v818_v20 }
  0x65   :  { %v472_v33 = vadd.f32 %v470_v44, %v367_v43  ;;  %v383_v38 = vmul.f32 %v376_v48, %v370_v46  ;;  %v264_v35 = vadd.f32 %v228_v58, %v201_v53  ;;  %v481_v54 = vrot.slane %v473_v23, %v802_v6 }
  0x66   :  { %v280_v52 = vadd.f32 %v278_v18, %v173_v42  ;;  %v369_v55 = vadd.f32 %v333_v14, %v306_v8  ;;  %v474_v57 = vadd.f32 %v438_v28, %v411_v21  ;;  %v170_v50 = vrot.slane %v159_v29, %v802_v6 }
  0x67   :  { %v493_v45 = vsub.f32 %v458_v49, %v472_v33  ;;  %v275_v59 = vrot.slane %v264_v35, %v802_v6  ;;  %v488_v47 = vmul.f32 %v481_v54, %v475_v51 }
  0x68   :  { %v385_v41 = vadd.f32 %v383_v38, %v280_v52  ;;  %v380_v56 = vrot.slane %v369_v55, %v802_v6  ;;  %v485_v60 = vrot.slane %v474_v57, %v802_v6  ;;  %v174_v20 = vmul.f32 %v170_v50, %v810_v16 }
  0x69   :  { %495 = vst [vmem:[#allocation10 + $0x4] sm:$0xf] %v493_v45  ;;  %v279_v25 = vmul.f32 %v275_v59, %v265_v13 }
  0x6a   :  { %v490_v53 = vadd.f32 %v488_v47, %v385_v41  ;;  %v384_v58 = vmul.f32 %v380_v56, %v370_v46 }
  0x6b   :  { %655 = shalt.err (!%p652_p8)
}
  0x6c   :  { %s656_s20 = scalar_lea.hbm %s918_s4, 128 }
  0x6d   :  { %p657_p9 = scmp.ne.s32.totalorder %s918_s4, %s656_s20  ;;  %p660_p10 = scmp.lt.u32.totalorder %s656_s20, %s918_s4 }
  0x6f   :  { %p662_p11 = pnand %p660_p10, %p657_p9 }
  0x71   :  { %665 = shalt.err (!%p662_p11)
}
  0x72   :  { %513 = dma.vmem_to_hbm [thread:$0]  %s508_s1, 128, %s918_s4, [#allocation4], %s703_s0, %s703_s0, %s704_s21   ;;  %v281_v6 = vadd.f32 %v279_v25, %v174_v20  ;;  %v489_v16 = vmul.f32 %v485_v60, %v475_v51  ;;  %v496_v61 = vsub.f32 %v490_v53, %v851_v4 }
  0x73   :  { %s708_s28 = smov [#allocation11]  }
  0x74   :  { %v386_v62 = vadd.f32 %v384_v58, %v281_v6  ;;  %v498_v63 = vsub.f32 %v496_v61, %v854_v11  ;;  %s519_s29 = sshll.u32 %s708_s28, 4  ;;  %s520_s29 = int_to_ptr.vmem [resolvable:$true] %s519_s29 }
  0x75   :  { %s666_s30 = scalar_lea.vmem %s520_s29, 128  ;;  %p671_p13 = scmp.lt.s32.totalorder %s520_s29, %s520_s29 }
  0x76   :  { %v491_v0 = vadd.f32 %v489_v16, %v386_v62  ;;  %500 = vst [vmem:[#allocation11] sm:$0xf] %v498_v63  ;;  %p667_p12 = scmp.ne.s32.totalorder %s520_s29, %s666_s30  ;;  %p672_p0 = scmp.lt.s32.totalorder %s666_s30, %s666_s30 }
  0x78   :  { %v497_v1 = vsub.f32 %v491_v0, %v458_v49  ;;  %p673_p1 = por %p672_p0, %p671_p13 }
  0x7a   :  { %v499_v2 = vsub.f32 %v497_v1, %v472_v33  ;;  %p674_p2 = pnand %p673_p1, %p667_p12 }
  0x7c   :  { %501 = vst [vmem:[#allocation11 + $0x4] sm:$0xf] %v499_v2 }
  0x7d   :  { %677 = shalt.err (!%p674_p2)
}
  0x7e   :  { %s678_s7 = scalar_lea.hbm %s919_s5, 128 }
  0x7f   :  { %p679_p3 = scmp.ne.s32.totalorder %s919_s5, %s678_s7  ;;  %p682_p4 = scmp.lt.u32.totalorder %s678_s7, %s919_s5 }
  0x81   :  { %p684_p5 = pnand %p682_p4, %p679_p3 }
  0x83   :  { %687 = shalt.err (!%p684_p5)
}
  0x84   :  { %525 = dma.vmem_to_hbm [thread:$0]  %s520_s29, 128, %s919_s5, [#allocation12], %s703_s0, %s703_s0, %s704_s21  }
  0x85   :  { %694 = dma.done.wait [#allocation4], 128  }
  0x86   :  { %695 = vsyncadd [#allocation4], 4294967168 }
  0x87   :  { %696 = dma.done.wait [#allocation12], 128  }
  0x88   :  { %697 = vsyncadd [#allocation12], 4294967168 }
  0x89   :  { %532 = vsyncpa [#allocation3], 1 }
  0x8a   :  { %533 = vsyncpa [#allocation6], 1 }
  0x8b   :  { %534 = vsyncpa [#allocation9], 1 }
  0x8c   :  { %535 = vsyncpa [#allocation4], 1 }
  0x8d   :  { %536 = vsyncpa [#allocation12], 1 }

</bundles_post_ra>
